<compile_context>
chip_gen: v5e
topology: v5e:2x2
jax: 0.10.0
libtpu: 0.0.40
codegen_flags: <defaults>
</compile_context>

<pallas_src>
import math
import numpy as np
import jax
import jax.numpy as jnp
from jax import lax
from jax.experimental import pallas as pl
from jax.experimental.pallas import tpu as pltpu

# ---- model hyper-parameters (small, consistent with the module) -------------
D_MODEL = 32                    # d_model
NUM_HEADS = 1                   # module uses 1
FF_HIDDEN = 4 * D_MODEL         # 128
SEQ = 8                         # sequence length
BATCH = 2                       # batch size (power of two: in-kernel id via shift/mask)
BS = SEQ * BATCH                # tokens per kernel invocation
EPS = 1e-5                      # nn.LayerNorm default eps
NEG_INF = -1e9                  # finite "-inf" for masked scores
HEAD_DIM = D_MODEL // NUM_HEADS
SCALE = 1.0 / math.sqrt(HEAD_DIM)
LOG2_BATCH = BATCH.bit_length() - 1


def _layernorm(y, gamma, beta):
    mu = jnp.mean(y, axis=-1, keepdims=True)
    var = jnp.mean((y - mu) ** 2, axis=-1, keepdims=True)
    return (y - mu) * lax.rsqrt(var + EPS) * gamma + beta


def decoder_block_kernel(x_ref, w_ref, w2_ref, vec_ref, o_ref):
    D = D_MODEL
    x = x_ref[...]                            # (BS, D) fp32, token t = s*BATCH + b
    w = w_ref[...]                            # (D, 8D) bf16: [Wq|Wk|Wv|Wo | W1]

    # packed per-channel vectors (one DMA): rows are
    # [b_attn(4D), b1(FF), g1, be1, bf2, g2, be2, pad]   (rows padded to 128 lanes)
    b_attn = vec_ref[0:1, :]                  # (1, 4D)
    b1 = vec_ref[1:2, :]                      # (1, FF)
    g1 = vec_ref[2:3, 0:D]
    be1 = vec_ref[3:4, 0:D]
    bf2 = vec_ref[4:5, 0:D]
    g2 = vec_ref[5:6, 0:D]
    be2 = vec_ref[6:7, 0:D]

    xb = x.astype(jnp.bfloat16)               # cast the input block once

    # ---- fused Q/K/V projection: one full-width MXU pass over all BS tokens.
    # The Wo column block is computed too (free at N=128) and simply ignored,
    # so the bf16 weight slab is never sliced at a non-128 lane offset.
    qkvo = jnp.dot(xb, w[:, :4 * D], preferred_element_type=jnp.float32) + b_attn
    qkv_b = qkvo.astype(jnp.bfloat16)         # one cast, slices reused below
    q = qkv_b[:, 0:D]
    k = qkv_b[:, D:2 * D]
    v = qkv_b[:, 2 * D:3 * D]

    # ---- ONE batched causal self-attention over all BS tokens ----
    s = lax.dot_general(q, k, (((1,), (1,)), ((), ())),
                        preferred_element_type=jnp.float32) * SCALE   # (BS, BS)
    ri = lax.broadcasted_iota(jnp.int32, (BS, BS), 0)
    ci = lax.broadcasted_iota(jnp.int32, (BS, BS), 1)
    same_batch = (ri & (BATCH - 1)) == (ci & (BATCH - 1))
    causal = (ci >> LOG2_BATCH) <= (ri >> LOG2_BATCH)
    # TODO(synk): an arbitrary (non-causal) float tgt_mask would need an extra ref;
    # the standard causal decoder mask is generated here instead.
    s = jnp.where(same_batch & causal, s, NEG_INF)

    m = jnp.max(s, axis=-1, keepdims=True)
    p = jnp.exp(s - m)
    p = p * pl.reciprocal(jnp.sum(p, axis=-1, keepdims=True), approx=True)
    attn = jnp.dot(p.astype(jnp.bfloat16), v, preferred_element_type=jnp.float32)

    # ---- output projection: full-width dot, keep only the Wo block of the result
    attn_full = jnp.dot(attn.astype(jnp.bfloat16), w[:, :4 * D],
                        preferred_element_type=jnp.float32)
    attn_out = attn_full[:, 3 * D:4 * D] + b_attn[:, 3 * D:4 * D]

    # ---- residual + LayerNorm 1 (dropout1 == identity in eval) ----
    x1 = _layernorm(x + attn_out, g1, be1)

    # ---- feed forward (W1 lives at a 128-aligned lane offset in the slab) ----
    h = jnp.dot(x1.astype(jnp.bfloat16), w[:, 4 * D:],
                preferred_element_type=jnp.float32) + b1
    h = jnp.maximum(h, 0.0)
    ff = jnp.dot(h.astype(jnp.bfloat16), w2_ref[...],
                 preferred_element_type=jnp.float32) + bf2

    # ---- residual + LayerNorm 2 (dropout2 == identity in eval) ----
    o_ref[...] = _layernorm(x1 + ff, g2, be2)


def pack_params(params):
    """Pack the 18 original tensors into 3 kernel operands (weights -> bf16)."""
    w_attn = jnp.concatenate(
        [params["wq"], params["wk"], params["wv"], params["wo"]], axis=1)   # (D, 4D)
    w_slab = jnp.concatenate([w_attn, params["w1"]], axis=1).astype(jnp.bfloat16)  # (D, 8D)
    w2 = params["w2"].astype(jnp.bfloat16)                                  # (FF, D)

    def row(v):   # pad a (1, n) vector to (1, FF_HIDDEN) lanes
        return jnp.pad(v, ((0, 0), (0, FF_HIDDEN - v.shape[1])))

    b_attn = jnp.concatenate(
        [params["bq"], params["bk"], params["bv"], params["bo"]], axis=1)   # (1, 4D)
    vecs = jnp.concatenate(
        [row(b_attn), row(params["bf1"]),
         row(params["g1"]), row(params["be1"]), row(params["bf2"]),
         row(params["g2"]), row(params["be2"]),
         jnp.zeros((1, FF_HIDDEN), jnp.float32)], axis=0)                   # (8, 128)
    return w_slab, w2, vecs


def decoder_block(x_sbd, params):
    """x_sbd: (S, B, D) float32 — same axis convention as nn.MultiheadAttention.
    No wrapper transposes: (S, B, D) -> (S*B, D) is a free leading-dim merge;
    the in-kernel mask encodes both causality and batch membership."""
    S, B, D = x_sbd.shape
    assert (S, B, D) == (SEQ, BATCH, D_MODEL) and (B & (B - 1)) == 0
    x_flat = x_sbd.reshape(S * B, D)
    w_slab, w2, vecs = pack_params(params)

    def full(shp):
        return pl.BlockSpec(shp, lambda i, _s=shp: tuple(0 for _ in _s))

    out = pl.pallas_call(
        decoder_block_kernel,
        out_shape=jax.ShapeDtypeStruct((S * B, D), jnp.float32),
        grid=(1,),
        in_specs=[
            full((S * B, D)),          # x (all tokens)
            full((D, 8 * D)),          # packed [Wq|Wk|Wv|Wo|W1] (bf16)
            full((FF_HIDDEN, D)),      # W2 (bf16)
            full((8, FF_HIDDEN)),      # packed biases + LN gammas/betas (fp32)
        ],
        out_specs=full((S * B, D)),
        compiler_params=pltpu.CompilerParams(dimension_semantics=("arbitrary",)),
    )(x_flat, w_slab, w2, vecs)

    return out.reshape(S, B, D)        # back to (S, B, D), no transpose


def reference(x_sbd, tgt_mask, params):
    """Pure-JAX fp32 reference mirroring the PyTorch forward (eval mode)."""
    x = jnp.transpose(x_sbd, (1, 0, 2))            # (B, S, D)
    q = x @ params["wq"] + params["bq"]
    k = x @ params["wk"] + params["bk"]
    v = x @ params["wv"] + params["bv"]
    s = jnp.einsum("bqd,bkd->bqk", q, k) * SCALE + tgt_mask
    p = jax.nn.softmax(s, axis=-1)
    attn = jnp.einsum("bqk,bkd->bqd", p, v) @ params["wo"] + params["bo"]

    def ln(y, g, b):
        mu = jnp.mean(y, -1, keepdims=True)
        var = jnp.mean((y - mu) ** 2, -1, keepdims=True)
        return (y - mu) / jnp.sqrt(var + EPS) * g + b

    x1 = ln(x + attn, params["g1"], params["be1"])
    ff = jnp.maximum(x1 @ params["w1"] + params["bf1"], 0.0) @ params["w2"] + params["bf2"]
    x2 = ln(x1 + ff, params["g2"], params["be2"])
    return jnp.transpose(x2, (1, 0, 2))


def init_params(key):
    ks = jax.random.split(key, 12)
    n = lambda k, shp, s=0.05: (s * jax.random.normal(k, shp)).astype(jnp.float32)
    # All weights stored as (in, out) so the kernel/reference do x @ W.
    return dict(
        wq=n(ks[0], (D_MODEL, D_MODEL)), bq=n(ks[1], (1, D_MODEL)),
        wk=n(ks[2], (D_MODEL, D_MODEL)), bk=n(ks[3], (1, D_MODEL)),
        wv=n(ks[4], (D_MODEL, D_MODEL)), bv=n(ks[5], (1, D_MODEL)),
        wo=n(ks[6], (D_MODEL, D_MODEL)), bo=n(ks[7], (1, D_MODEL)),
        g1=jnp.ones((1, D_MODEL), jnp.float32), be1=jnp.zeros((1, D_MODEL), jnp.float32),
        w1=n(ks[8], (D_MODEL, FF_HIDDEN)), bf1=n(ks[9], (1, FF_HIDDEN)),
        w2=n(ks[10], (FF_HIDDEN, D_MODEL)), bf2=n(ks[11], (1, D_MODEL)),
        g2=jnp.ones((1, D_MODEL), jnp.float32), be2=jnp.zeros((1, D_MODEL), jnp.float32),
    )


if __name__ == "__main__":
    key = jax.random.PRNGKey(0)
    kx, kp = jax.random.split(key)

    x = jax.random.normal(kx, (SEQ, BATCH, D_MODEL), dtype=jnp.float32)  # (S, B, D)
    params = init_params(kp)

    # standard causal additive mask (used by the reference; the kernel generates
    # the equivalent causal + batch-membership mask in-kernel)
    causal = jnp.triu(jnp.full((SEQ, SEQ), NEG_INF, jnp.float32), k=1)

    out = jax.block_until_ready(decoder_block(x, params))
    ref = reference(x, causal, params)
    np.testing.assert_allclose(np.asarray(out), np.asarray(ref), rtol=2e-2, atol=2e-2)

    print("KERNEL_OK")
</pallas_src>

<mosaic_0001>
module attributes {stable_mosaic.version = 11 : i64} {
  func.func @decoder_block_kernel(%arg0: i32, %arg1: memref<16x32xf32, #tpu.memory_space<vmem>>, %arg2: memref<32x256xbf16, #tpu.memory_space<vmem>>, %arg3: memref<128x32xbf16, #tpu.memory_space<vmem>>, %arg4: memref<8x128xf32, #tpu.memory_space<vmem>>, %arg5: memref<16x32xf32, #tpu.memory_space<vmem>>) attributes {dimension_semantics = [#tpu.dimension_semantics<arbitrary>], iteration_bounds = array<i64: 1>, scalar_prefetch = 0 : i64, scratch_operands = 0 : i64, tpu.core_type = #tpu.core_type<tc>, window_params = [{pipeline_mode = #tpu.pipeline_mode<synchronous>, transform_indices = @transform_0, window_bounds = array<i64: 16, 32>}, {pipeline_mode = #tpu.pipeline_mode<synchronous>, transform_indices = @transform_1, window_bounds = array<i64: 32, 256>}, {pipeline_mode = #tpu.pipeline_mode<synchronous>, transform_indices = @transform_2, window_bounds = array<i64: 128, 32>}, {pipeline_mode = #tpu.pipeline_mode<synchronous>, transform_indices = @transform_3, window_bounds = array<i64: 8, 128>}, {pipeline_mode = #tpu.pipeline_mode<synchronous>, transform_indices = @transform_4, window_bounds = array<i64: 16, 32>}]} {
    %c0 = arith.constant 0 : index
    %c0_0 = arith.constant 0 : index
    %0 = vector.load %arg1[%c0, %c0_0] : memref<16x32xf32, #tpu.memory_space<vmem>>, vector<16x32xf32>
    %c0_1 = arith.constant 0 : index
    %c0_2 = arith.constant 0 : index
    %1 = vector.load %arg2[%c0_1, %c0_2] : memref<32x256xbf16, #tpu.memory_space<vmem>>, vector<32x256xbf16>
    %c0_3 = arith.constant 0 : index
    %c0_4 = arith.constant 0 : index
    %2 = vector.load %arg4[%c0_3, %c0_4] : memref<8x128xf32, #tpu.memory_space<vmem>>, vector<1x128xf32>
    %c1 = arith.constant 1 : index
    %c0_5 = arith.constant 0 : index
    %3 = vector.load %arg4[%c1, %c0_5] : memref<8x128xf32, #tpu.memory_space<vmem>>, vector<1x128xf32>
    %c2 = arith.constant 2 : index
    %c0_6 = arith.constant 0 : index
    %4 = vector.load %arg4[%c2, %c0_6] : memref<8x128xf32, #tpu.memory_space<vmem>>, vector<1x32xf32>
    %c3 = arith.constant 3 : index
    %c0_7 = arith.constant 0 : index
    %5 = vector.load %arg4[%c3, %c0_7] : memref<8x128xf32, #tpu.memory_space<vmem>>, vector<1x32xf32>
    %c4 = arith.constant 4 : index
    %c0_8 = arith.constant 0 : index
    %6 = vector.load %arg4[%c4, %c0_8] : memref<8x128xf32, #tpu.memory_space<vmem>>, vector<1x32xf32>
    %c5 = arith.constant 5 : index
    %c0_9 = arith.constant 0 : index
    %7 = vector.load %arg4[%c5, %c0_9] : memref<8x128xf32, #tpu.memory_space<vmem>>, vector<1x32xf32>
    %c6 = arith.constant 6 : index
    %c0_10 = arith.constant 0 : index
    %8 = vector.load %arg4[%c6, %c0_10] : memref<8x128xf32, #tpu.memory_space<vmem>>, vector<1x32xf32>
    %9 = arith.truncf %0 : vector<16x32xf32> to vector<16x32xbf16>
    %10 = vector.extract_strided_slice %1 {offsets = [0, 0], sizes = [32, 128], strides = [1, 1]} : vector<32x256xbf16> to vector<32x128xbf16>
    %cst = arith.constant dense<0.000000e+00> : vector<16x128xf32>
    %11 = tpu.matmul %9, %10, %cst {dimension_numbers = #tpu.dot_dimension_numbers<[1], [0], [0], [1], [0, 0, 1, 1], [], []>} : vector<16x32xbf16>, vector<32x128xbf16>, vector<16x128xf32> -> vector<16x128xf32>
    %12 = vector.broadcast %2 : vector<1x128xf32> to vector<16x128xf32>
    %13 = arith.addf %11, %12 : vector<16x128xf32>
    %14 = arith.truncf %13 : vector<16x128xf32> to vector<16x128xbf16>
    %15 = vector.extract_strided_slice %14 {offsets = [0, 0], sizes = [16, 32], strides = [1, 1]} : vector<16x128xbf16> to vector<16x32xbf16>
    %16 = vector.extract_strided_slice %14 {offsets = [0, 32], sizes = [16, 32], strides = [1, 1]} : vector<16x128xbf16> to vector<16x32xbf16>
    %17 = vector.extract_strided_slice %14 {offsets = [0, 64], sizes = [16, 32], strides = [1, 1]} : vector<16x128xbf16> to vector<16x32xbf16>
    %cst_11 = arith.constant dense<0.000000e+00> : vector<16x16xf32>
    %18 = tpu.matmul %15, %16, %cst_11 {dimension_numbers = #tpu.dot_dimension_numbers<[1], [1], [0], [0], [0, 0, 1, 0], [], []>} : vector<16x32xbf16>, vector<16x32xbf16>, vector<16x16xf32> -> vector<16x16xf32>
    %cst_12 = arith.constant 0.176776692 : f32
    %19 = vector.broadcast %cst_12 : f32 to vector<16x16xf32>
    %20 = arith.mulf %18, %19 : vector<16x16xf32>
    %21 = tpu.iota {dimensions = array<i32: 0>} : vector<16x16xi32>
    %22 = tpu.iota {dimensions = array<i32: 1>} : vector<16x16xi32>
    %c1_i32 = arith.constant 1 : i32
    %23 = vector.broadcast %c1_i32 : i32 to vector<16x16xi32>
    %24 = arith.andi %21, %23 : vector<16x16xi32>
    %c1_i32_13 = arith.constant 1 : i32
    %25 = vector.broadcast %c1_i32_13 : i32 to vector<16x16xi32>
    %26 = arith.andi %22, %25 : vector<16x16xi32>
    %27 = arith.cmpi eq, %24, %26 : vector<16x16xi32>
    %c1_i32_14 = arith.constant 1 : i32
    %28 = vector.broadcast %c1_i32_14 : i32 to vector<16x16xi32>
    %29 = arith.shrsi %22, %28 : vector<16x16xi32>
    %c1_i32_15 = arith.constant 1 : i32
    %30 = vector.broadcast %c1_i32_15 : i32 to vector<16x16xi32>
    %31 = arith.shrsi %21, %30 : vector<16x16xi32>
    %32 = arith.cmpi sle, %29, %31 : vector<16x16xi32>
    %33 = arith.andi %27, %32 : vector<16x16xi1>
    %cst_16 = arith.constant -1.000000e+09 : f32
    %34 = vector.broadcast %cst_16 : f32 to vector<16x16xf32>
    %35 = arith.select %33, %20, %34 : vector<16x16xi1>, vector<16x16xf32>
    %cst_17 = arith.constant dense<0xFF800000> : vector<16xf32>
    %36 = vector.multi_reduction <maximumf>, %35, %cst_17 [1] : vector<16x16xf32> to vector<16xf32>
    %37 = vector.shape_cast %36 : vector<16xf32> to vector<16x1xf32>
    %38 = vector.broadcast %37 : vector<16x1xf32> to vector<16x16xf32>
    %39 = arith.subf %35, %38 : vector<16x16xf32>
    %40 = math.exp %39 : vector<16x16xf32>
    %cst_18 = arith.constant dense<0.000000e+00> : vector<16xf32>
    %41 = vector.multi_reduction <add>, %40, %cst_18 [1] : vector<16x16xf32> to vector<16xf32>
    %42 = vector.shape_cast %41 : vector<16xf32> to vector<16x1xf32>
    %43 = tpu.reciprocal %42 {approx = true} : vector<16x1xf32> -> vector<16x1xf32>
    %44 = vector.broadcast %43 : vector<16x1xf32> to vector<16x16xf32>
    %45 = arith.mulf %40, %44 : vector<16x16xf32>
    %46 = arith.truncf %45 : vector<16x16xf32> to vector<16x16xbf16>
    %cst_19 = arith.constant dense<0.000000e+00> : vector<16x32xf32>
    %47 = tpu.matmul %46, %17, %cst_19 {dimension_numbers = #tpu.dot_dimension_numbers<[1], [0], [0], [1], [0, 0, 1, 1], [], []>} : vector<16x16xbf16>, vector<16x32xbf16>, vector<16x32xf32> -> vector<16x32xf32>
    %48 = arith.truncf %47 : vector<16x32xf32> to vector<16x32xbf16>
    %49 = vector.extract_strided_slice %1 {offsets = [0, 0], sizes = [32, 128], strides = [1, 1]} : vector<32x256xbf16> to vector<32x128xbf16>
    %cst_20 = arith.constant dense<0.000000e+00> : vector<16x128xf32>
    %50 = tpu.matmul %48, %49, %cst_20 {dimension_numbers = #tpu.dot_dimension_numbers<[1], [0], [0], [1], [0, 0, 1, 1], [], []>} : vector<16x32xbf16>, vector<32x128xbf16>, vector<16x128xf32> -> vector<16x128xf32>
    %51 = vector.extract_strided_slice %50 {offsets = [0, 96], sizes = [16, 32], strides = [1, 1]} : vector<16x128xf32> to vector<16x32xf32>
    %52 = vector.extract_strided_slice %2 {offsets = [0, 96], sizes = [1, 32], strides = [1, 1]} : vector<1x128xf32> to vector<1x32xf32>
    %53 = vector.broadcast %52 : vector<1x32xf32> to vector<16x32xf32>
    %54 = arith.addf %51, %53 : vector<16x32xf32>
    %55 = arith.addf %0, %54 : vector<16x32xf32>
    %cst_21 = arith.constant dense<0.000000e+00> : vector<16xf32>
    %56 = vector.multi_reduction <add>, %55, %cst_21 [1] : vector<16x32xf32> to vector<16xf32>
    %57 = vector.shape_cast %56 : vector<16xf32> to vector<16x1xf32>
    %cst_22 = arith.constant 3.200000e+01 : f32
    %58 = vector.broadcast %cst_22 : f32 to vector<16x1xf32>
    %59 = arith.divf %57, %58 : vector<16x1xf32>
    %60 = vector.broadcast %59 : vector<16x1xf32> to vector<16x32xf32>
    %61 = arith.subf %55, %60 : vector<16x32xf32>
    %62 = arith.mulf %61, %61 : vector<16x32xf32>
    %cst_23 = arith.constant dense<0.000000e+00> : vector<16xf32>
    %63 = vector.multi_reduction <add>, %62, %cst_23 [1] : vector<16x32xf32> to vector<16xf32>
    %64 = vector.shape_cast %63 : vector<16xf32> to vector<16x1xf32>
    %cst_24 = arith.constant 3.200000e+01 : f32
    %65 = vector.broadcast %cst_24 : f32 to vector<16x1xf32>
    %66 = arith.divf %64, %65 : vector<16x1xf32>
    %67 = vector.broadcast %59 : vector<16x1xf32> to vector<16x32xf32>
    %68 = arith.subf %55, %67 : vector<16x32xf32>
    %cst_25 = arith.constant 9.99999974E-6 : f32
    %69 = vector.broadcast %cst_25 : f32 to vector<16x1xf32>
    %70 = arith.addf %66, %69 : vector<16x1xf32>
    %71 = math.rsqrt %70 : vector<16x1xf32>
    %72 = vector.broadcast %71 : vector<16x1xf32> to vector<16x32xf32>
    %73 = arith.mulf %68, %72 : vector<16x32xf32>
    %74 = vector.broadcast %4 : vector<1x32xf32> to vector<16x32xf32>
    %75 = arith.mulf %73, %74 : vector<16x32xf32>
    %76 = vector.broadcast %5 : vector<1x32xf32> to vector<16x32xf32>
    %77 = arith.addf %75, %76 : vector<16x32xf32>
    %78 = arith.truncf %77 : vector<16x32xf32> to vector<16x32xbf16>
    %79 = vector.extract_strided_slice %1 {offsets = [0, 128], sizes = [32, 128], strides = [1, 1]} : vector<32x256xbf16> to vector<32x128xbf16>
    %cst_26 = arith.constant dense<0.000000e+00> : vector<16x128xf32>
    %80 = tpu.matmul %78, %79, %cst_26 {dimension_numbers = #tpu.dot_dimension_numbers<[1], [0], [0], [1], [0, 0, 1, 1], [], []>} : vector<16x32xbf16>, vector<32x128xbf16>, vector<16x128xf32> -> vector<16x128xf32>
    %81 = vector.broadcast %3 : vector<1x128xf32> to vector<16x128xf32>
    %82 = arith.addf %80, %81 : vector<16x128xf32>
    %cst_27 = arith.constant 0.000000e+00 : f32
    %83 = vector.broadcast %cst_27 : f32 to vector<16x128xf32>
    %84 = arith.maximumf %82, %83 : vector<16x128xf32>
    %85 = arith.truncf %84 : vector<16x128xf32> to vector<16x128xbf16>
    %c0_28 = arith.constant 0 : index
    %c0_29 = arith.constant 0 : index
    %86 = vector.load %arg3[%c0_28, %c0_29] : memref<128x32xbf16, #tpu.memory_space<vmem>>, vector<128x32xbf16>
    %cst_30 = arith.constant dense<0.000000e+00> : vector<16x32xf32>
    %87 = tpu.matmul %85, %86, %cst_30 {dimension_numbers = #tpu.dot_dimension_numbers<[1], [0], [0], [1], [0, 0, 1, 1], [], []>} : vector<16x128xbf16>, vector<128x32xbf16>, vector<16x32xf32> -> vector<16x32xf32>
    %88 = vector.broadcast %6 : vector<1x32xf32> to vector<16x32xf32>
    %89 = arith.addf %87, %88 : vector<16x32xf32>
    %90 = arith.addf %77, %89 : vector<16x32xf32>
    %cst_31 = arith.constant dense<0.000000e+00> : vector<16xf32>
    %91 = vector.multi_reduction <add>, %90, %cst_31 [1] : vector<16x32xf32> to vector<16xf32>
    %92 = vector.shape_cast %91 : vector<16xf32> to vector<16x1xf32>
    %cst_32 = arith.constant 3.200000e+01 : f32
    %93 = vector.broadcast %cst_32 : f32 to vector<16x1xf32>
    %94 = arith.divf %92, %93 : vector<16x1xf32>
    %95 = vector.broadcast %94 : vector<16x1xf32> to vector<16x32xf32>
    %96 = arith.subf %90, %95 : vector<16x32xf32>
    %97 = arith.mulf %96, %96 : vector<16x32xf32>
    %cst_33 = arith.constant dense<0.000000e+00> : vector<16xf32>
    %98 = vector.multi_reduction <add>, %97, %cst_33 [1] : vector<16x32xf32> to vector<16xf32>
    %99 = vector.shape_cast %98 : vector<16xf32> to vector<16x1xf32>
    %cst_34 = arith.constant 3.200000e+01 : f32
    %100 = vector.broadcast %cst_34 : f32 to vector<16x1xf32>
    %101 = arith.divf %99, %100 : vector<16x1xf32>
    %102 = vector.broadcast %94 : vector<16x1xf32> to vector<16x32xf32>
    %103 = arith.subf %90, %102 : vector<16x32xf32>
    %cst_35 = arith.constant 9.99999974E-6 : f32
    %104 = vector.broadcast %cst_35 : f32 to vector<16x1xf32>
    %105 = arith.addf %101, %104 : vector<16x1xf32>
    %106 = math.rsqrt %105 : vector<16x1xf32>
    %107 = vector.broadcast %106 : vector<16x1xf32> to vector<16x32xf32>
    %108 = arith.mulf %103, %107 : vector<16x32xf32>
    %109 = vector.broadcast %7 : vector<1x32xf32> to vector<16x32xf32>
    %110 = arith.mulf %108, %109 : vector<16x32xf32>
    %111 = vector.broadcast %8 : vector<1x32xf32> to vector<16x32xf32>
    %112 = arith.addf %110, %111 : vector<16x32xf32>
    %c0_36 = arith.constant 0 : index
    %c0_37 = arith.constant 0 : index
    %113 = vector.load %arg5[%c0_36, %c0_37] : memref<16x32xf32, #tpu.memory_space<vmem>>, vector<16x32xf32>
    tpu.vector_store %arg5[%c0_36, %c0_37], %112 {strides = array<i32>} : memref<16x32xf32, #tpu.memory_space<vmem>>, vector<16x32xf32>,
    return
  }
  func.func @transform_0(%arg0: i32) -> (i32, i32) {
    %c0_i32 = arith.constant 0 : i32
    %c0_i32_0 = arith.constant 0 : i32
    %c0_i32_1 = arith.constant 0 : i32
    return %c0_i32, %c0_i32_0 : i32, i32
  }
  func.func @transform_1(%arg0: i32) -> (i32, i32) {
    %c0_i32 = arith.constant 0 : i32
    %c0_i32_0 = arith.constant 0 : i32
    %c0_i32_1 = arith.constant 0 : i32
    return %c0_i32, %c0_i32_0 : i32, i32
  }
  func.func @transform_2(%arg0: i32) -> (i32, i32) {
    %c0_i32 = arith.constant 0 : i32
    %c0_i32_0 = arith.constant 0 : i32
    %c0_i32_1 = arith.constant 0 : i32
    return %c0_i32, %c0_i32_0 : i32, i32
  }
  func.func @transform_3(%arg0: i32) -> (i32, i32) {
    %c0_i32 = arith.constant 0 : i32
    %c0_i32_0 = arith.constant 0 : i32
    %c0_i32_1 = arith.constant 0 : i32
    return %c0_i32, %c0_i32_0 : i32, i32
  }
  func.func @transform_4(%arg0: i32) -> (i32, i32) {
    %c0_i32 = arith.constant 0 : i32
    %c0_i32_0 = arith.constant 0 : i32
    %c0_i32_1 = arith.constant 0 : i32
    return %c0_i32, %c0_i32_0 : i32, i32
  }
}

</mosaic_0001>

<bundles_post_ra>
// kernel: tpu_custom_call.1
= control target key start
LH: loop header
LB: loop body
LE: loop exit
PB: predicated region body
PF: predicated region fallthrough
CT: control target
= control target key end

     0   :  { %s703_s0 = inlined_call_operand.vmem [shape: f32[16,32], index: 0, kind: input, shape index: {}]   ;;  %s704_s1 = inlined_call_operand.vmem [shape: bf16[32,256], index: 1, kind: input, shape index: {}]   ;;  %s705_s2 = inlined_call_operand.vmem [shape: bf16[128,32], index: 2, kind: input, shape index: {}]   ;;  %s706_s3 = inlined_call_operand.vmem [shape: f32[8,128], index: 3, kind: input, shape index: {}]   ;;  %s707_s4 = inlined_call_operand.hbm [shape: f32[16,32], index: 4, kind: output, shape index: {}]  }
   0x1   :  { %v432_v0 = vld [vmem:[%s704_s1 + $0x10] sm:$0xf]  ;;  %v482_v1 = vld [vmem:[%s704_s1 + $0x14] sm:$0xf0]  ;;  %v428_v2 = vld [vmem:[%s704_s1] sm:$0xf] }
   0x2   :  { %v433_v3 = vor.u32 %v482_v1, %v432_v0  ;;  %v480_v4 = vld [vmem:[%s704_s1 + $0x4] sm:$0xf0]  ;;  %v596_v5 = vld [vmem:[%s703_s0] sm:$0xff] }
   0x3   :  { %v601_v6 = vld [vmem:[%s703_s0 + $0x8] sm:$0xff]  ;;  %v429_v7 = vor.u32 %v480_v4, %v428_v2 }
   0x4   :  { %56 = vmatpush.bf16.msra.mxu1 %v433_v3  ;;  %168 = vmatpush.bf16.msra.mxu3 %v433_v3 }
   0x5   :  { %9 = vsyncpa [#allocation3], 0  ;;  %v32_v8 = vpack.c.bf16 %v601_v6, %v596_v5  ;;  %vm46_vm0 = vcmask 261120   ;;  %v609_v10 = vld [vmem:[%s706_s3] ss:$0 sm:$0xff]  ;;  %s549_s0 = smov 96   ;;  %v95_v21 = vlaneseq }
   0x6   :  { %vm114_vm4 = vcmask 130048   ;;  %s550_s29 = smov 64   ;;  %s551_s30 = smov 32  }
   0x7   :  { %v96_v22 = vshrl.u32 %v95_v21, 7  ;;  %v99_v23 = vand.u32 127, %v95_v21  ;;  %s553_s12 = smov [#allocation2]   ;;  %s414_s16 = sshll.u32 %s707_s4, 4  ;;  %s415_s16 = int_to_ptr.hbm [resolvable:$true] %s414_s16 }
   0x8   :  { %57 = vmatpush.bf16.msra.mxu1 %v429_v7  ;;  %169 = vmatpush.bf16.msra.mxu3 %v429_v7  ;;  %s412_s13 = sshll.u32 %s553_s12, 4  ;;  %s413_s13 = int_to_ptr.vmem [resolvable:$true] %s412_s13 }
   0x9   :  { %v100_v24 = vand.u32 1, %v96_v22  ;;  %v102_v25 = vand.u32 1, %v99_v23  ;;  %v105_v26 = vshra.s32 %v99_v23, 1  ;;  %v106_v27 = vshra.s32 %v96_v22, 1  ;;  %v481_v23 = vld [vmem:[%s704_s1 + $0x14] sm:$0xf] }
   0xa   :  { %v97_v28 = vadd.s32 8, %v96_v22 }
   0xb   :  { %434 = vmatmul.msk.bf16.vlgmr.msra.gmra.mxu1 %vm46_vm0, %v32_v8  ;;  %vm103_vm1 = vcmp.eq.s32.totalorder %v100_v24, %v102_v25  ;;  %vm108_vm2 = vcmp.le.s32.totalorder %v105_v26, %v106_v27  ;;  %v552_v8 = vmov 32.0   ;;  %v442_v24 = vld [vmem:[%s704_s1 + $0x18] sm:$0xf0]  ;;  %v438_v27 = vld [vmem:[%s704_s1 + $0x8] sm:$0xf0] }
   0xc   :  { %vm110_vm3 = vmand %vm103_vm1, %vm108_vm2  ;;  %v101_v31 = vand.u32 1, %v97_v28  ;;  %v107_v32 = vshra.s32 %v97_v28, 1 }
   0xe   :  { %vm104_vm5 = vcmp.eq.s32.totalorder %v101_v31, %v102_v25  ;;  %vm109_vm6 = vcmp.le.s32.totalorder %v105_v26, %v107_v32  ;;  %v445_v25 = vor.u32 %v481_v23, %v442_v24  ;;  %v479_v26 = vld [vmem:[%s704_s1 + $0x4] sm:$0xf]  ;;  %v490_v32 = vld [vmem:[%s705_s2 + $0x38] sm:$0xff]  ;;  %s555_s1 = smov 8  }
   0xf   :  { %vm111_vm7 = vmand %vm104_vm5, %vm109_vm6  ;;  %340 = vmatpush.bf16.msra.mxu0 %v490_v32 }
  0x88   :  { %v59_v9 = vpop.f32.mrf.mxu1 }
  0x89   :  { %v60_v11 = vadd.f32 %v609_v10, %v59_v9 }
  0x8b   :  { %v64_v13 = vpack.c.bf16 %v60_v11, %v60_v11 }
  0x8d   :  { %v68_v16 = vunpack.c.l.b16 %v64_v13 }
  0x90   :  { %v61_v12 = vpop.f32.mrf.mxu1 }
  0x91   :  { %v62_v14 = vadd.f32 %v609_v10, %v61_v12 }
  0x93   :  { %v65_v15 = vpack.c.bf16 %v62_v14, %v62_v14 }
  0x95   :  { %v69_v17 = vunpack.c.l.b16 %v65_v15 }
  0x97   :  { %v70_v18 = vpack.c.b16 %v69_v17, %v68_v16 }
  0x99   :  { %71 = vrot.lane.b32.xlu0 %v70_v18, %s549_s0 }
 0x10b   :  { %v72_v19 = vpop.permute.xlu0 %71 }
 0x10c   :  { %v77_v20 = vsel %vm46_vm0, %v72_v19, 0 }
 0x10d   :  { %86 = vmatpush.bf16.xpose.msrb.mxu1 %v77_v20 }
 0x114   :  { %435 = vmatmul.msk.bf16.vlgmr.msrb.gmra.mxu1 %vm46_vm0, %v70_v18 }
 0x191   :  { %v88_v29 = vpop.f32.mrf.mxu1 }
 0x192   :  { %v93_v30 = vmul.f32 0.17677669, %v88_v29  ;;  %v441_v29 = vor.u32 %v479_v26, %v438_v27 }
 0x194   :  { %v112_v33 = vsel %vm110_vm3, %v93_v30, -1e+09 }
 0x195   :  { %v115_v34 = vsel %vm114_vm4, %v112_v33, -inf }
 0x196   :  { %116 = vmax.xlane.f32.xlu0 %v115_v34 }
 0x199   :  { %v90_v35 = vpop.f32.mrf.mxu1 }
 0x19a   :  { %v94_v36 = vmul.f32 0.17677669, %v90_v35  ;;  %v489_v35 = vld [vmem:[%s705_s2 + $0x30] sm:$0xff] }
 0x19b   :  { %341 = vmatpush.bf16.msra.mxu0 %v489_v35 }
 0x19c   :  { %v113_v37 = vsel %vm111_vm7, %v94_v36, -1e+09 }
 0x19d   :  { %v118_v38 = vsel %vm114_vm4, %v113_v37, -inf }
 0x19e   :  { %119 = vmax.xlane.f32.xlu1 %v118_v38 }
 0x209   :  { %v117_v39 = vpop.xlane.xlu0 %116 }
 0x20a   :  { %v121_v40 = vsub.f32 %v112_v33, %v117_v39  ;;  %v488_v39 = vld [vmem:[%s705_s2 + $0x28] sm:$0xff] }
 0x20b   :  { %342 = vmatpush.bf16.msra.mxu0 %v488_v39 }
 0x20c   :  { %v123_v41 = vmul.f32 1.442695, %v121_v40 }
 0x20e   :  { %505 = vpow2.f32 %v123_v41 }
 0x211   :  { %v120_v42 = vpop.xlane.xlu1 %119 }
 0x212   :  { %v122_v43 = vsub.f32 %v113_v37, %v120_v42  ;;  %v487_v42 = vld [vmem:[%s705_s2 + $0x20] sm:$0xff] }
 0x213   :  { %343 = vmatpush.bf16.msra.mxu0 %v487_v42 }
 0x214   :  { %v506_v44 = vpop.eup %505  ;;  %v125_v45 = vmul.f32 1.442695, %v122_v43 }
 0x215   :  { %v127_v46 = vsel %vm114_vm4, %v506_v44, 0.0 }
 0x216   :  { %507 = vpow2.f32 %v125_v45  ;;  %128 = vadd.xlane.f32.xlu1 %v127_v46 }
 0x21c   :  { %v508_v47 = vpop.eup %507 }
 0x21d   :  { %v130_v48 = vsel %vm114_vm4, %v508_v47, 0.0 }
 0x21e   :  { %131 = vadd.xlane.f32.xlu2 %v130_v48 }
 0x236   :  { %138 = vrot.lane.b32.xlu2 %v70_v18, %s550_s29 }
 0x289   :  { %v129_v49 = vpop.xlane.xlu1 %128 }
 0x28a   :  { %509 = vrcp.f32 %v129_v49 }
 0x290   :  { %v510_v51 = vpop.eup %509 }
 0x291   :  { %v132_v50 = vpop.xlane.xlu2 %131  ;;  %v135_v54 = vmul.f32 %v510_v51, %v506_v44 }
 0x292   :  { %511 = vrcp.f32 %v132_v50 }
 0x293   :  { %513 = vrcp.f32 %v552_v8 }
 0x298   :  { %v512_v52 = vpop.eup %511 }
 0x299   :  { %v139_v53 = vpop.permute.xlu2 %138  ;;  %v136_v55 = vmul.f32 %v512_v52, %v508_v47  ;;  %v514_v9 = vpop.eup %513  ;;  %v499_v52 = vld [vmem:[%s706_s3 + $0x2] ss:$0 sm:$0xff] }
 0x29a   :  { %151 = vmatpush.bf16.msra.mxu2 %v139_v53  ;;  %v195_v11 = vmul.f32 32.0, %v514_v9  ;;  %vm199_vm8 = vweird.f32 %v514_v9 }
 0x29b   :  { %v137_v56 = vpack.c.bf16 %v136_v55, %v135_v54 }
 0x29c   :  { %v196_v12 = vsub.f32 1.0, %v195_v11 }
 0x29d   :  { %436 = vmatmul.msk.bf16.vlgmr.msra.gmra.mxu2 %vm114_vm4, %v137_v56 }
 0x29e   :  { %v197_v13 = vmul.f32 %v514_v9, %v196_v12  ;;  %264 = vmatpush.bf16.msrb.mxu2 %v445_v25 }
 0x2a2   :  { %265 = vmatpush.bf16.msrb.mxu2 %v441_v29 }
 0x320   :  { %v153_v57 = vpop.f32.mrf.mxu2 }
 0x328   :  { %v155_v58 = vpop.f32.mrf.mxu2 }
 0x329   :  { %v158_v59 = vpack.c.bf16 %v155_v58, %v153_v57  ;;  %v500_v57 = vld [vmem:[%s706_s3 + $0x3] ss:$0 sm:$0xff] }
 0x32b   :  { %437 = vmatmul.msk.bf16.vlgmr.msra.gmra.mxu3 %vm46_vm0, %v158_v59 }
 0x3ae   :  { %v171_v60 = vpop.f32.mrf.mxu3 }
 0x3af   :  { %v176_v61 = vadd.f32 %v609_v10, %v171_v60 }
 0x3b1   :  { %180 = vrot.lane.b32.xlu1 %v176_v61, %s551_s30 }
 0x3b6   :  { %v173_v62 = vpop.f32.mrf.mxu3 }
 0x3b7   :  { %v177_v63 = vadd.f32 %v609_v10, %v173_v62  ;;  %v198_v10 = vadd.f32 %v514_v9, %v197_v13  ;;  %v486_v62 = vld [vmem:[%s705_s2 + $0x18] sm:$0xff]  ;;  %v502_v13 = vld [vmem:[%s706_s3 + $0x4] ss:$0 sm:$0xff] }
 0x3b8   :  { %344 = vmatpush.bf16.msra.mxu0 %v486_v62 }
 0x3b9   :  { %182 = vrot.lane.b32.xlu2 %v177_v63, %s551_s30  ;;  %v627_v14 = vsel %vm199_vm8, %v514_v9, %v198_v10  ;;  %v485_v63 = vld [vmem:[%s705_s2 + $0x10] sm:$0xff] }
 0x3bc   :  { %345 = vmatpush.bf16.msra.mxu0 %v485_v63 }
 0x413   :  { %v183_v0 = vpop.permute.xlu2 %182 }
 0x414   :  { %v187_v1 = vadd.f32 %v183_v0, %v601_v6  ;;  %v484_v0 = vld [vmem:[%s705_s2 + $0x8] sm:$0xff] }
 0x415   :  { %346 = vmatpush.bf16.msra.mxu0 %v484_v0 }
 0x416   :  { %v191_v2 = vsel %vm46_vm0, %v187_v1, 0.0 }
 0x417   :  { %192 = vadd.xlane.f32.xlu1 %v191_v2 }
 0x423   :  { %v181_v3 = vpop.permute.xlu1 %180 }
 0x424   :  { %v186_v4 = vadd.f32 %v181_v3, %v596_v5  ;;  %v501_v3 = vld [vmem:[%s706_s3 + $0x1] ss:$0 sm:$0xff] }
 0x426   :  { %v188_v7 = vsel %vm46_vm0, %v186_v4, 0.0 }
 0x427   :  { %189 = vadd.xlane.f32.xlu2 %v188_v7 }
 0x48a   :  { %v193_v6 = vpop.xlane.xlu1 %192 }
 0x48b   :  { %v202_v17 = vmul.f32 %v627_v14, %v193_v6 }
 0x48d   :  { %v204_v19 = vsub.f32 %v187_v1, %v202_v17  ;;  %v483_v1 = vld [vmem:[%s705_s2] sm:$0xff] }
 0x48e   :  { %347 = vmatpush.bf16.msra.mxu0 %v483_v1 }
 0x48f   :  { %v206_v21 = vmul.f32 %v204_v19, %v204_v19 }
 0x491   :  { %v210_v22 = vsel %vm46_vm0, %v206_v21, 0.0 }
 0x49a   :  { %v190_v15 = vpop.xlane.xlu2 %189 }
 0x49b   :  { %v201_v16 = vmul.f32 %v627_v14, %v190_v15 }
 0x49d   :  { %v203_v5 = vsub.f32 %v186_v4, %v201_v16 }
 0x49f   :  { %v205_v18 = vmul.f32 %v203_v5, %v203_v5 }
 0x4a1   :  { %v207_v20 = vsel %vm46_vm0, %v205_v18, 0.0 }
 0x4a2   :  { %208 = vadd.xlane.f32.xlu0 %v207_v20 }
 0x4aa   :  { %211 = vadd.xlane.f32.xlu0 %v210_v22 }
 0x515   :  { %v209_v28 = vpop.xlane.xlu0 %208 }
 0x516   :  { %v213_v30 = vmul.f32 %v209_v28, %v627_v14 }
 0x518   :  { %v215_v31 = vadd.f32 1e-05, %v213_v30 }
 0x51a   :  { %515 = vrsqrt.f32 %v215_v31  ;;  %vm223_vm10 = vweird.f32 %v215_v31 }
 0x51d   :  { %v212_v33 = vpop.xlane.xlu0 %211 }
 0x51e   :  { %v214_v34 = vmul.f32 %v212_v33, %v627_v14 }
 0x520   :  { %v516_v36 = vpop.eup %515  ;;  %v216_v37 = vadd.f32 1e-05, %v214_v34 }
 0x521   :  { %v218_v38 = vmul.f32 %v516_v36, %v215_v31  ;;  %vm224_vm9 = vweird.f32 %v516_v36 }
 0x522   :  { %517 = vrsqrt.f32 %v216_v37  ;;  %vm225_vm11 = vmor %vm223_vm10, %vm224_vm9  ;;  %vm233_vm13 = vweird.f32 %v216_v37 }
 0x523   :  { %v219_v40 = vmul.f32 %v516_v36, %v218_v38 }
 0x525   :  { %v220_v41 = vmul.f32 0.5, %v219_v40 }
 0x527   :  { %v221_v43 = vsub.f32 1.5, %v220_v41 }
 0x528   :  { %v518_v44 = vpop.eup %517 }
 0x529   :  { %v222_v45 = vmul.f32 %v516_v36, %v221_v43  ;;  %v228_v46 = vmul.f32 %v518_v44, %v216_v37  ;;  %vm234_vm12 = vweird.f32 %v518_v44 }
 0x52a   :  { %vm235_vm14 = vmor %vm233_vm13, %vm234_vm12 }
 0x52b   :  { %v229_v47 = vmul.f32 %v518_v44, %v228_v46  ;;  %v226_v48 = vsel %vm225_vm11, %v516_v36, %v222_v45 }
 0x52c   :  { %v237_v51 = vmul.f32 %v226_v48, %v203_v5 }
 0x52d   :  { %v230_v49 = vmul.f32 0.5, %v229_v47  ;;  %v504_v47 = vld [vmem:[%s706_s3 + $0x6] ss:$0 sm:$0xff] }
 0x52e   :  { %v240_v56 = vmul.f32 %v499_v52, %v237_v51 }
 0x52f   :  { %v231_v50 = vsub.f32 1.5, %v230_v49 }
 0x530   :  { %v243_v59 = vadd.f32 %v500_v57, %v240_v56 }
 0x531   :  { %v232_v53 = vmul.f32 %v518_v44, %v231_v50 }
 0x533   :  { %v236_v54 = vsel %vm235_vm14, %v518_v44, %v232_v53  ;;  %v503_v44 = vld [vmem:[%s706_s3 + $0x5] ss:$0 sm:$0xff]  ;;  %s554_s3 = smov 128  }
 0x534   :  { %v238_v55 = vmul.f32 %v236_v54, %v204_v19 }
 0x536   :  { %v241_v58 = vmul.f32 %v499_v52, %v238_v55 }
 0x538   :  { %v244_v60 = vadd.f32 %v500_v57, %v241_v58 }
 0x53a   :  { %v245_v61 = vpack.c.bf16 %v244_v60, %v243_v59 }
 0x53c   :  { %446 = vmatmul.msk.bf16.vlgmr.msrb.gmra.mxu2 %vm46_vm0, %v245_v61 }
 0x5bf   :  { %v267_v2 = vpop.f32.mrf.mxu2 }
 0x5c0   :  { %v268_v4 = vadd.f32 %v501_v3, %v267_v2 }
 0x5c2   :  { %v272_v9 = vmax.f32 %v268_v4, 0.0 }
 0x5c7   :  { %v269_v7 = vpop.f32.mrf.mxu2 }
 0x5c8   :  { %v270_v8 = vadd.f32 %v501_v3, %v269_v7 }
 0x5ca   :  { %v273_v11 = vmax.f32 %v270_v8, 0.0 }
 0x5cc   :  { %v274_v12 = vpack.c.bf16 %v273_v11, %v272_v9 }
 0x5ce   :  { %348 = vmatmul.bf16.vlgmr.msra.gmra.mxu0 %v274_v12 }
 0x64b   :  { %v349_v10 = vpop.f32.mrf.mxu0 }
 0x64c   :  { %v350_v6 = vadd.f32 %v502_v13, %v349_v10 }
 0x64e   :  { %v354_v15 = vadd.f32 %v350_v6, %v243_v59 }
 0x650   :  { %v356_v16 = vsel %vm46_vm0, %v354_v15, 0.0 }
 0x651   :  { %357 = vadd.xlane.f32.xlu0 %v356_v16 }
 0x653   :  { %v351_v17 = vpop.f32.mrf.mxu0 }
 0x654   :  { %v352_v5 = vadd.f32 %v502_v13, %v351_v17 }
 0x656   :  { %v355_v18 = vadd.f32 %v352_v5, %v244_v60 }
 0x658   :  { %v359_v19 = vsel %vm46_vm0, %v355_v18, 0.0 }
 0x659   :  { %360 = vadd.xlane.f32.xlu0 %v359_v19 }
 0x6c4   :  { %v358_v20 = vpop.xlane.xlu0 %357 }
 0x6c5   :  { %v362_v21 = vmul.f32 %v358_v20, %v627_v14 }
 0x6c7   :  { %v364_v22 = vsub.f32 %v354_v15, %v362_v21 }
 0x6c9   :  { %v366_v23 = vmul.f32 %v364_v22, %v364_v22 }
 0x6cb   :  { %v368_v24 = vsel %vm46_vm0, %v366_v23, 0.0 }
 0x6cc   :  { %369 = vadd.xlane.f32.xlu2 %v368_v24  ;;  %v361_v25 = vpop.xlane.xlu0 %360 }
 0x6cd   :  { %v363_v26 = vmul.f32 %v361_v25, %v627_v14 }
 0x6cf   :  { %v365_v27 = vsub.f32 %v355_v18, %v363_v26 }
 0x6d1   :  { %v367_v28 = vmul.f32 %v365_v27, %v365_v27 }
 0x6d3   :  { %v371_v29 = vsel %vm46_vm0, %v367_v28, 0.0 }
 0x6d4   :  { %372 = vadd.xlane.f32.xlu0 %v371_v29 }
 0x73f   :  { %v370_v30 = vpop.xlane.xlu2 %369 }
 0x740   :  { %v374_v31 = vmul.f32 %v370_v30, %v627_v14 }
 0x742   :  { %v376_v32 = vadd.f32 1e-05, %v374_v31 }
 0x744   :  { %519 = vrsqrt.f32 %v376_v32  ;;  %vm384_vm1 = vweird.f32 %v376_v32 }
 0x747   :  { %v373_v33 = vpop.xlane.xlu0 %372 }
 0x748   :  { %v375_v34 = vmul.f32 %v373_v33, %v627_v14 }
 0x74a   :  { %v520_v35 = vpop.eup %519  ;;  %v377_v36 = vadd.f32 1e-05, %v375_v34 }
 0x74b   :  { %v379_v37 = vmul.f32 %v520_v35, %v376_v32  ;;  %vm385_vm15 = vweird.f32 %v520_v35 }
 0x74c   :  { %521 = vrsqrt.f32 %v377_v36  ;;  %vm386_vm2 = vmor %vm384_vm1, %vm385_vm15  ;;  %vm394_vm4 = vweird.f32 %v377_v36 }
 0x74d   :  { %v380_v38 = vmul.f32 %v520_v35, %v379_v37 }
 0x74f   :  { %v381_v39 = vmul.f32 0.5, %v380_v38 }
 0x751   :  { %v382_v40 = vsub.f32 1.5, %v381_v39 }
 0x752   :  { %v522_v41 = vpop.eup %521 }
 0x753   :  { %v383_v42 = vmul.f32 %v520_v35, %v382_v40  ;;  %v389_v43 = vmul.f32 %v522_v41, %v377_v36  ;;  %vm395_vm3 = vweird.f32 %v522_v41 }
 0x754   :  { %vm396_vm5 = vmor %vm394_vm4, %vm395_vm3 }
 0x755   :  { %v387_v45 = vsel %vm386_vm2, %v520_v35, %v383_v42  ;;  %v390_v46 = vmul.f32 %v522_v41, %v389_v43 }
 0x756   :  { %v398_v14 = vmul.f32 %v387_v45, %v364_v22 }
 0x757   :  { %v391_v48 = vmul.f32 0.5, %v390_v46 }
 0x758   :  { %v401_v49 = vmul.f32 %v503_v44, %v398_v14 }
 0x759   :  { %v392_v50 = vsub.f32 1.5, %v391_v48 }
 0x75a   :  { %v404_v51 = vadd.f32 %v504_v47, %v401_v49 }
 0x75b   :  { %v393_v52 = vmul.f32 %v522_v41, %v392_v50 }
 0x75c   :  { %406 = vst.msk [vmem:[#allocation2] sm:$0xff] %vm46_vm0, %v404_v51 }
 0x75d   :  { %v397_v53 = vsel %vm396_vm5, %v522_v41, %v393_v52 }
 0x75e   :  { %v399_v54 = vmul.f32 %v397_v53, %v365_v27 }
 0x760   :  { %v402_v55 = vmul.f32 %v503_v44, %v399_v54 }
 0x762   :  { %v405_v56 = vadd.f32 %v504_v47, %v402_v55 }
 0x764   :  { %407 = vst.msk [vmem:[#allocation2 + $0x8] sm:$0xff] %vm46_vm0, %v405_v56 }
 0x765   :  { %420 = dma.vmem_to_hbm [thread:$0]  %s413_s13, 256, %s415_s16, [#allocation3], %s554_s3, %s554_s3, %s555_s1  }
 0x766   :  { %547 = dma.done.wait [#allocation3], 256  }
 0x767   :  { %548 = vsyncadd [#allocation3], 4294967040 }
 0x768   :  { %425 = vsyncpa [#allocation3], 1 }

</bundles_post_ra>
